<compile_context>
chip_gen: v7x
topology: tpu7x:2x2x1
jax: 0.10.0
libtpu: 0.0.40
codegen_flags: <defaults>
</compile_context>

<pallas_src>
import jax
import jax.numpy as jnp
from jax.experimental import pallas as pl
from jax.experimental.pallas import tpu as pltpu


def _round_up(x, mult):
    return ((x + mult - 1) // mult) * mult


def _cdiv(a, b):
    return -(-a // b)


def _default_num_cores():
    """2 for dual-TensorCore chips (v4/v5p megacore, v7x), else 1."""
    try:
        kind = jax.devices()[0].device_kind.lower()
    except Exception:
        return 1
    if any(tag in kind for tag in ("v4", "v5p", "v7", "7x")):
        return 2
    return 1


def masked_mse_loss(pred, mask, target, *, row_tile=None, num_cores=None,
                    vmem_limit_bytes=40 * 1024 * 1024):
    """Masked, pixel-normalized MSE loss.

    pred, target: [B, L, D].  Pass them in their native bf16 when available: the kernel
                  is pure HBM streaming, so f32 inputs double the bytes (and roughly the
                  wall-clock); widening to f32 happens only inside the kernel.
    mask:         [B, L] (1.0 = patch contributes to the loss).
    Returns a scalar float32 loss.
    """
    B, L, D = pred.shape
    if target.shape != (B, L, D) or mask.shape != (B, L):
        raise ValueError("shape mismatch between pred/target/mask")
    if D < 2:
        raise ValueError("unbiased per-patch variance needs D >= 2 (torch returns NaN)")
    N = B * L

    itemsize = max(jnp.dtype(pred.dtype).itemsize, jnp.dtype(target.dtype).itemsize)
    if row_tile is None:
        # Budget = double-buffered pred/target streams + ~4 whole-tile f32 temporaries
        # (t, p, err, err2 are live around the mean/var reduction barriers).
        budget = 24 * 1024 * 1024
        bytes_per_row = 2 * 2 * D * itemsize + 4 * D * 4
        row_tile = min(1024, max(16, budget // bytes_per_row))
    row_tile = max(16, (int(row_tile) // 16) * 16)   # clean f32(8)/bf16(16) sublane packing
    row_tile = min(row_tile, _round_up(N, 16))       # never larger than the whole input

    # Effective core split: drop the split whenever a core's row range would start at or
    # past N, so every grid block is at least partially in bounds (no fully-OOB DMA).
    nc = int(num_cores) if num_cores is not None else _default_num_cores()
    nc = max(1, nc)
    while nc > 1 and (nc - 1) * _cdiv(N, nc * row_tile) * row_tile >= N:
        nc -= 1
    steps = _cdiv(N, nc * row_tile)
    n_blocks = nc * steps
    n_pad = n_blocks * row_tile

    pred2 = pred.reshape(N, D)     # native dtype; NO padding copy of the big inputs
    tgt2 = target.reshape(N, D)
    mask_flat = mask.reshape(N).astype(jnp.float32)
    if n_pad != N:
        mask_flat = jnp.pad(mask_flat, (0, n_pad - N))   # tiny (N floats), zeros
    mask3 = mask_flat.reshape(n_blocks, 1, row_tile)     # lane-dense mask rows

    inv_d = 1.0 / D
    inv_dm1 = 1.0 / (D - 1)

    def kernel(pred_ref, tgt_ref, mask_ref, loss_sum_ref):
        c = pl.program_id(0)
        i = pl.program_id(1)

        @pl.when(i == 0)
        def _():
            loss_sum_ref[...] = jnp.zeros_like(loss_sum_ref)

        t = tgt_ref[...].astype(jnp.float32)    # (T, D)
        p = pred_ref[...].astype(jnp.float32)   # (T, D)
        m = mask_ref[0]                         # (1, T) lane-dense, already f32

        # One-pass mean / unbiased variance (single sweep over the tile).
        sum_t = jnp.sum(t, axis=-1, keepdims=True)        # (T, 1)
        sum_t2 = jnp.sum(t * t, axis=-1, keepdims=True)   # (T, 1)
        mean = sum_t * inv_d
        var = jnp.maximum((sum_t2 - sum_t * mean) * inv_dm1, 0.0)
        inv_std = jax.lax.rsqrt(var + 1e-6)               # EUP slot

        err = p - (t - mean) * inv_std                    # t_norm fused into err
        err2 = err * err

        # The last block of each core may be partial (no pred/target padding): zero the
        # garbage rows BEFORE the mask dot — the MXU multiplies, it does not select,
        # and 0 * NaN/Inf from uninitialized edge data would poison the loss sum.
        base = (c * steps + i) * row_tile
        row_idx = base + jax.lax.broadcasted_iota(jnp.int32, (row_tile, 1), 0)
        err2 = jnp.where(row_idx < N, err2, 0.0)

        # Masked row-loss reduction on the otherwise-idle MXU: (1,T) x (T,D) -> (1,D),
        # then one tiny lane reduce.  Keeps the big err^2 cross-lane reduce off the XLU.
        partial = jnp.dot(m, err2, preferred_element_type=jnp.float32)   # (1, D)
        block_sum = jnp.sum(partial, axis=-1, keepdims=True) * inv_d     # (1, 1)
        loss_sum_ref[...] += block_sum.reshape(1, 1, 1)

    def row_map(c, i):
        return (c * steps + i, 0)

    def mask_map(c, i):
        return (c * steps + i, 0, 0)

    cost = pl.CostEstimate(
        flops=int(10 * N * D),
        transcendentals=int(N),
        bytes_accessed=int(N * D * (jnp.dtype(pred.dtype).itemsize
                                    + jnp.dtype(target.dtype).itemsize)
                           + n_pad * 4 + nc * 4),
    )

    loss_sums = pl.pallas_call(
        kernel,
        out_shape=jax.ShapeDtypeStruct((nc, 1, 1), jnp.float32),
        grid_spec=pltpu.PrefetchScalarGridSpec(
            num_scalar_prefetch=0,
            grid=(nc, steps),
            in_specs=[
                pl.BlockSpec((row_tile, D), row_map),
                pl.BlockSpec((row_tile, D), row_map),
                pl.BlockSpec((1, 1, row_tile), mask_map),
            ],
            out_specs=pl.BlockSpec((1, 1, 1), lambda c, i: (c, 0, 0)),
        ),
        compiler_params=pltpu.CompilerParams(
            dimension_semantics=("parallel", "arbitrary"),
            vmem_limit_bytes=vmem_limit_bytes,
        ),
        cost_estimate=cost,
    )(pred2, tgt2, mask3)

    mask_sum = jnp.sum(mask.astype(jnp.float32))
    return jnp.sum(loss_sums) / mask_sum


def _masked_mse_loss_ref(pred, mask, target):
    """Pure-JAX reference mirroring the PyTorch module."""
    pred = pred.astype(jnp.float32)
    target = target.astype(jnp.float32)
    mask = mask.astype(jnp.float32)
    mean = target.mean(axis=-1, keepdims=True)
    var = target.var(axis=-1, keepdims=True, ddof=1)   # torch.var default is unbiased
    target = (target - mean) / jnp.sqrt(var + 1e-6)
    loss = (pred - target) ** 2
    loss = loss.mean(axis=-1)
    loss = loss * mask
    return loss.sum() / mask.sum()


if __name__ == "__main__":
    key = jax.random.PRNGKey(0)
    keys = jax.random.split(key, 9)

    # Tolerance note: the masked err^2 reduction runs on the MXU f32 path, which may use
    # bf16-decomposed passes; everything else is exact f32 on the VPU/EUP.  rtol=1e-3
    # covers both lowering variants while still catching any semantic bug.

    # Case 1: small, tile-divisible shapes (batch=2, num_patches=8, patch_dim=32), f32.
    B, L, D = 2, 8, 32
    pred = jax.random.normal(keys[0], (B, L, D), dtype=jnp.float32)
    target = jax.random.normal(keys[1], (B, L, D), dtype=jnp.float32)
    mask = (jax.random.uniform(keys[2], (B, L)) > 0.5).astype(jnp.float32)
    mask = mask.at[0, 0].set(1.0)
    out = jax.block_until_ready(masked_mse_loss(pred, mask, target))
    ref = _masked_mse_loss_ref(pred, mask, target)
    assert jnp.allclose(out, ref, rtol=1e-3, atol=1e-5), (out, ref)

    # Case 2: ragged row count (exercises the partial edge block + in-kernel row guard),
    # bf16 inputs = the documented fast path.
    B2, L2, D2 = 2, 13, 32
    pred_b = jax.random.normal(keys[3], (B2, L2, D2), dtype=jnp.bfloat16)
    target_b = jax.random.normal(keys[4], (B2, L2, D2), dtype=jnp.bfloat16)
    mask_b = (jax.random.uniform(keys[5], (B2, L2)) > 0.5).astype(jnp.float32)
    mask_b = mask_b.at[0, 0].set(1.0)
    out_b = jax.block_until_ready(masked_mse_loss(pred_b, mask_b, target_b))
    ref_b = _masked_mse_loss_ref(pred_b, mask_b, target_b)
    assert jnp.allclose(out_b, ref_b, rtol=1e-3, atol=1e-4), (out_b, ref_b)

    # Case 3: multi-step accumulation + explicit 2-way core split (serial loop on
    # single-TensorCore chips, sharded across TCs on dual-core chips).
    B3, L3, D3 = 4, 96, 32
    pred_c = jax.random.normal(keys[6], (B3, L3, D3), dtype=jnp.float32)
    target_c = jax.random.normal(keys[7], (B3, L3, D3), dtype=jnp.float32)
    mask_c = (jax.random.uniform(keys[8], (B3, L3)) > 0.5).astype(jnp.float32)
    mask_c = mask_c.at[0, 0].set(1.0)
    out_c = jax.block_until_ready(
        masked_mse_loss(pred_c, mask_c, target_c, row_tile=64, num_cores=2))
    ref_c = _masked_mse_loss_ref(pred_c, mask_c, target_c)
    assert jnp.allclose(out_c, ref_c, rtol=1e-3, atol=1e-5), (out_c, ref_c)

    print("KERNEL_OK")
</pallas_src>

<mosaic_0001>
module attributes {stable_mosaic.version = 11 : i64} {
  func.func @kernel(%arg0: i32, %arg1: i32, %arg2: memref<16x32xf32, #tpu.memory_space<vmem>>, %arg3: memref<16x32xf32, #tpu.memory_space<vmem>>, %arg4: memref<1x1x16xf32, #tpu.memory_space<vmem>>, %arg5: memref<1x1x1xf32, #tpu.memory_space<vmem>>) attributes {dimension_semantics = [#tpu.dimension_semantics<parallel>, #tpu.dimension_semantics<arbitrary>], iteration_bounds = array<i64: 1, 1>, scalar_prefetch = 0 : i64, scratch_operands = 0 : i64, tpu.core_type = #tpu.core_type<tc>, window_params = [{transform_indices = @transform_0, window_bounds = array<i64: 16, 32>}, {transform_indices = @transform_1, window_bounds = array<i64: 16, 32>}, {transform_indices = @transform_2, window_bounds = array<i64: 1, 1, 16>}, {transform_indices = @transform_3, window_bounds = array<i64: 1, 1, 1>}]} {
    %c0_i32 = arith.constant 0 : i32
    %0 = arith.cmpi eq, %arg1, %c0_i32 : i32
    %1 = arith.extui %0 : i1 to i32
    %c0_i32_0 = arith.constant 0 : i32
    %2 = arith.cmpi ne, %1, %c0_i32_0 : i32
    scf.if %2 {
      %cst_23 = arith.constant 0.000000e+00 : f32
      %50 = vector.broadcast %cst_23 : f32 to vector<1x1x1xf32>
      %c0_24 = arith.constant 0 : index
      %c0_25 = arith.constant 0 : index
      %c0_26 = arith.constant 0 : index
      %51 = vector.load %arg5[%c0_24, %c0_25, %c0_26] : memref<1x1x1xf32, #tpu.memory_space<vmem>>, vector<1x1x1xf32>
      tpu.vector_store %arg5[%c0_24, %c0_25, %c0_26], %50 {strides = array<i32>} : memref<1x1x1xf32, #tpu.memory_space<vmem>>, vector<1x1x1xf32>,
    } else {
    }
    %c0 = arith.constant 0 : index
    %c0_1 = arith.constant 0 : index
    %3 = vector.load %arg3[%c0, %c0_1] : memref<16x32xf32, #tpu.memory_space<vmem>>, vector<16x32xf32>
    %c0_2 = arith.constant 0 : index
    %c0_3 = arith.constant 0 : index
    %4 = vector.load %arg2[%c0_2, %c0_3] : memref<16x32xf32, #tpu.memory_space<vmem>>, vector<16x32xf32>
    %c0_4 = arith.constant 0 : index
    %c0_5 = arith.constant 0 : index
    %c0_6 = arith.constant 0 : index
    %5 = vector.load %arg4[%c0_4, %c0_5, %c0_6] : memref<1x1x16xf32, #tpu.memory_space<vmem>>, vector<1x1x16xf32>
    %6 = vector.shape_cast %5 : vector<1x1x16xf32> to vector<1x16xf32>
    %cst = arith.constant dense<0.000000e+00> : vector<16xf32>
    %7 = vector.multi_reduction <add>, %3, %cst [1] : vector<16x32xf32> to vector<16xf32>
    %8 = vector.shape_cast %7 : vector<16xf32> to vector<16x1xf32>
    %9 = arith.mulf %3, %3 : vector<16x32xf32>
    %cst_7 = arith.constant dense<0.000000e+00> : vector<16xf32>
    %10 = vector.multi_reduction <add>, %9, %cst_7 [1] : vector<16x32xf32> to vector<16xf32>
    %11 = vector.shape_cast %10 : vector<16xf32> to vector<16x1xf32>
    %cst_8 = arith.constant 3.125000e-02 : f32
    %12 = vector.broadcast %cst_8 : f32 to vector<16x1xf32>
    %13 = arith.mulf %8, %12 : vector<16x1xf32>
    %14 = arith.mulf %8, %13 : vector<16x1xf32>
    %15 = arith.subf %11, %14 : vector<16x1xf32>
    %cst_9 = arith.constant 0.0322580636 : f32
    %16 = vector.broadcast %cst_9 : f32 to vector<16x1xf32>
    %17 = arith.mulf %15, %16 : vector<16x1xf32>
    %cst_10 = arith.constant 0.000000e+00 : f32
    %18 = vector.broadcast %cst_10 : f32 to vector<16x1xf32>
    %19 = arith.maximumf %17, %18 : vector<16x1xf32>
    %cst_11 = arith.constant 9.99999997E-7 : f32
    %20 = vector.broadcast %cst_11 : f32 to vector<16x1xf32>
    %21 = arith.addf %19, %20 : vector<16x1xf32>
    %22 = math.rsqrt %21 : vector<16x1xf32>
    %23 = vector.broadcast %13 : vector<16x1xf32> to vector<16x32xf32>
    %24 = arith.subf %3, %23 : vector<16x32xf32>
    %25 = vector.broadcast %22 : vector<16x1xf32> to vector<16x32xf32>
    %26 = arith.mulf %24, %25 : vector<16x32xf32>
    %27 = arith.subf %4, %26 : vector<16x32xf32>
    %28 = arith.mulf %27, %27 : vector<16x32xf32>
    %c1_i32 = arith.constant 1 : i32
    %29 = arith.muli %arg0, %c1_i32 : i32
    %30 = arith.addi %29, %arg1 : i32
    %c16_i32 = arith.constant 16 : i32
    %31 = arith.muli %30, %c16_i32 : i32
    %32 = tpu.iota {dimensions = array<i32: 0>} : vector<16x1xi32>
    %33 = vector.broadcast %31 : i32 to vector<16x1xi32>
    %34 = arith.addi %33, %32 : vector<16x1xi32>
    %c16_i32_12 = arith.constant 16 : i32
    %35 = vector.broadcast %c16_i32_12 : i32 to vector<16x1xi32>
    %36 = arith.cmpi slt, %34, %35 : vector<16x1xi32>
    %cst_13 = arith.constant 0.000000e+00 : f32
    %37 = vector.shape_cast %36 : vector<16x1xi1> to vector<16x1xi1>
    %38 = vector.broadcast %37 : vector<16x1xi1> to vector<16x32xi1>
    %39 = vector.broadcast %cst_13 : f32 to vector<16x32xf32>
    %40 = arith.select %38, %28, %39 : vector<16x32xi1>, vector<16x32xf32>
    %cst_14 = arith.constant dense<0.000000e+00> : vector<1x32xf32>
    %41 = tpu.matmul %6, %40, %cst_14 {dimension_numbers = #tpu.dot_dimension_numbers<[1], [0], [0], [1], [0, 0, 1, 1], [], []>} : vector<1x16xf32>, vector<16x32xf32>, vector<1x32xf32> -> vector<1x32xf32>
    %cst_15 = arith.constant dense<0.000000e+00> : vector<1xf32>
    %42 = vector.multi_reduction <add>, %41, %cst_15 [1] : vector<1x32xf32> to vector<1xf32>
    %43 = vector.shape_cast %42 : vector<1xf32> to vector<1x1xf32>
    %cst_16 = arith.constant 3.125000e-02 : f32
    %44 = vector.broadcast %cst_16 : f32 to vector<1x1xf32>
    %45 = arith.mulf %43, %44 : vector<1x1xf32>
    %c0_17 = arith.constant 0 : index
    %c0_18 = arith.constant 0 : index
    %c0_19 = arith.constant 0 : index
    %46 = vector.load %arg5[%c0_17, %c0_18, %c0_19] : memref<1x1x1xf32, #tpu.memory_space<vmem>>, vector<1x1x1xf32>
    %47 = vector.shape_cast %45 : vector<1x1xf32> to vector<1x1x1xf32>
    %48 = arith.addf %46, %47 : vector<1x1x1xf32>
    %c0_20 = arith.constant 0 : index
    %c0_21 = arith.constant 0 : index
    %c0_22 = arith.constant 0 : index
    %49 = vector.load %arg5[%c0_20, %c0_21, %c0_22] : memref<1x1x1xf32, #tpu.memory_space<vmem>>, vector<1x1x1xf32>
    tpu.vector_store %arg5[%c0_20, %c0_21, %c0_22], %48 {strides = array<i32>} : memref<1x1x1xf32, #tpu.memory_space<vmem>>, vector<1x1x1xf32>,
    return
  }
  func.func @transform_0(%arg0: i32, %arg1: i32) -> (i32, i32) {
    %c1_i32 = arith.constant 1 : i32
    %0 = arith.muli %arg0, %c1_i32 : i32
    %1 = arith.addi %0, %arg1 : i32
    %c0_i32 = arith.constant 0 : i32
    %c0_i32_0 = arith.constant 0 : i32
    return %1, %c0_i32 : i32, i32
  }
  func.func @transform_1(%arg0: i32, %arg1: i32) -> (i32, i32) {
    %c1_i32 = arith.constant 1 : i32
    %0 = arith.muli %arg0, %c1_i32 : i32
    %1 = arith.addi %0, %arg1 : i32
    %c0_i32 = arith.constant 0 : i32
    %c0_i32_0 = arith.constant 0 : i32
    return %1, %c0_i32 : i32, i32
  }
  func.func @transform_2(%arg0: i32, %arg1: i32) -> (i32, i32, i32) {
    %c1_i32 = arith.constant 1 : i32
    %0 = arith.muli %arg0, %c1_i32 : i32
    %1 = arith.addi %0, %arg1 : i32
    %c0_i32 = arith.constant 0 : i32
    %c0_i32_0 = arith.constant 0 : i32
    %c0_i32_1 = arith.constant 0 : i32
    return %1, %c0_i32, %c0_i32_0 : i32, i32, i32
  }
  func.func @transform_3(%arg0: i32, %arg1: i32) -> (i32, i32, i32) {
    %c0_i32 = arith.constant 0 : i32
    %c0_i32_0 = arith.constant 0 : i32
    %c0_i32_1 = arith.constant 0 : i32
    return %arg0, %c0_i32, %c0_i32_0 : i32, i32, i32
  }
}

</mosaic_0001>

<bundles_post_ra>
// kernel: tpu_custom_call.1
= control target key start
LH: loop header
LB: loop body
LE: loop exit
PB: predicated region body
PF: predicated region fallthrough
CT: control target
= control target key end

     0   :  { %8 = vsyncpa [#allocation3], 0  ;;  %s402_s0 = inlined_call_operand.hbm [shape: f32[16,32], index: 0, kind: input, shape index: {}]   ;;  %s403_s1 = inlined_call_operand.hbm [shape: f32[16,32], index: 1, kind: input, shape index: {}]   ;;  %s404_s2 = inlined_call_operand.vmem [shape: f32[1,1,16], index: 2, kind: input, shape index: {}]   ;;  %s405_s3 = inlined_call_operand.hbm [shape: f32[1,1,1], index: 3, kind: output, shape index: {}]  }
   0x1   :  { %9 = vsyncpa [#allocation6], 0 }
   0x2   :  { %10 = vsyncpa [#allocation4], 0  ;;  %s333_s12 = smov [#allocation2]   ;;  %s261_s16 = scalar_lea.hbm %s402_s0, 256 }
   0x3   :  { %s20_s13 = sshll.u32 %s333_s12, 4  ;;  %p262_p0 = scmp.ne.s32.totalorder %s402_s0, %s261_s16  ;;  %s21_s13 = int_to_ptr.vmem [resolvable:$true] %s20_s13 }
   0x4   :  { %p265_p1 = scmp.lt.u32.totalorder %s261_s16, %s402_s0 }
   0x6   :  { %p267_p2 = pnand %p265_p1, %p262_p0 }
   0x8   :  { %270 = shalt.err (!%p267_p2)
}
   0x9   :  { %s271_s21 = scalar_lea.vmem %s21_s13, 256  ;;  %p276_p4 = scmp.lt.s32.totalorder %s21_s13, %s21_s13 }
   0xa   :  { %p272_p3 = scmp.ne.s32.totalorder %s21_s13, %s271_s21  ;;  %p277_p5 = scmp.lt.s32.totalorder %s271_s21, %s271_s21 }
   0xc   :  { %p278_p6 = por %p277_p5, %p276_p4 }
   0xe   :  { %p279_p7 = pnand %p278_p6, %p272_p3 }
  0x10   :  { %282 = shalt.err (!%p279_p7)
}
  0x11   :  { %s334_s22 = smov 128   ;;  %s335_s23 = smov 8  }
  0x12   :  { %26 = dma.hbm_to_vmem [thread:$0]  %s402_s0, 256, %s21_s13, [#allocation3], %s334_s22, %s334_s22, %s335_s23  }
  0x13   :  { %s336_s26 = smov [#allocation5]   ;;  %s283_s30 = scalar_lea.hbm %s403_s1, 256 }
  0x14   :  { %s36_s27 = sshll.u32 %s336_s26, 4  ;;  %p284_p8 = scmp.ne.s32.totalorder %s403_s1, %s283_s30  ;;  %s37_s27 = int_to_ptr.vmem [resolvable:$true] %s36_s27 }
  0x15   :  { %p287_p9 = scmp.lt.u32.totalorder %s283_s30, %s403_s1 }
  0x17   :  { %p289_p10 = pnand %p287_p9, %p284_p8 }
  0x19   :  { %292 = shalt.err (!%p289_p10)
}
  0x1a   :  { %s293_s8 = scalar_lea.vmem %s37_s27, 256  ;;  %p298_p12 = scmp.lt.s32.totalorder %s37_s27, %s37_s27 }
  0x1b   :  { %p294_p11 = scmp.ne.s32.totalorder %s37_s27, %s293_s8  ;;  %p299_p13 = scmp.lt.s32.totalorder %s293_s8, %s293_s8 }
  0x1d   :  { %p300_p0 = por %p299_p13, %p298_p12 }
  0x1f   :  { %p301_p1 = pnand %p300_p0, %p294_p11 }
  0x21   :  { %304 = shalt.err (!%p301_p1)
}
  0x22   :  { %42 = dma.hbm_to_vmem [thread:$0]  %s403_s1, 256, %s37_s27, [#allocation6], %s334_s22, %s334_s22, %s335_s23  }
  0x23   :  { %327 = dma.done.wait [#allocation3], 256  }
  0x24   :  { %328 = vsyncadd [#allocation3], 4294967040 }
  0x25   :  { %329 = dma.done.wait [#allocation6], 256  }
  0x26   :  { %330 = vsyncadd [#allocation6], 4294967040  ;;  %vm80_vm0 = vcmask 261120   ;;  %v75_v0 = vld [vmem:[#allocation5] sm:$0xff]  ;;  %v76_v1 = vld [vmem:[#allocation5 + $0x8] sm:$0xff]  ;;  %v337_v8 = vmov 0.0|0.0  }
  0x27   :  { %v81_v2 = vsel %vm80_vm0, %v75_v0, 0.0  ;;  %v87_v3 = vmul.f32 %v75_v0, %v75_v0  ;;  %v88_v4 = vmul.f32 %v76_v1, %v76_v1  ;;  %v84_v6 = vsel %vm80_vm0, %v76_v1, 0.0  ;;  %246 = vmatprep.subr.bf16.mxu0 %v337_v8  ;;  %v77_v29 = vld [vmem:[#allocation2] sm:$0xff]  ;;  %v78_v32 = vld [vmem:[#allocation2 + $0x8] sm:$0xff]  ;;  %s340_s11 = smov [#allocation7]  }
  0x28   :  { %82 = vadd.xlane.f32.xlu0 %v81_v2  ;;  %vm73_vm1 = vcmask 0   ;;  %v338_v9 = vmov 0.0   ;;  %vm339_vm2 = vmmov 0   ;;  %v79_v39 = vld [vmem:[%s404_s2] sm:$0x1]  ;;  %vm133_vm3 = vcmask 130048  }
  0x29   :  { %v89_v5 = vsel %vm80_vm0, %v87_v3, 0.0  ;;  %v92_v7 = vsel %vm80_vm0, %v88_v4, 0.0  ;;  %74 = vst.msk [vmem:[#allocation7] sm:$0x1] %vm73_vm1, %v338_v9  ;;  %243 = vmatprep.mubr.msk.f32.mxu0 %vm339_vm2, %v338_v9  ;;  %vm207_vm4 = vcmask 253952   ;;  %s222_s12 = sshll.u32 %s340_s11, 4  ;;  %s223_s12 = int_to_ptr.vmem [resolvable:$true] %s222_s12 }
  0x2a   :  { %90 = vadd.xlane.f32.xlu1 %v89_v5  ;;  %s305_s13 = scalar_lea.vmem %s223_s12, 16  ;;  %s309_s14 = scalar_lea.vmem %s223_s12, 32 }
  0x2b   :  { %p306_p2 = scmp.ne.s32.totalorder %s223_s12, %s305_s13  ;;  %p310_p3 = scmp.lt.s32.totalorder %s223_s12, %s223_s12 }
  0x2c   :  { %85 = vadd.xlane.f32.xlu0 %v84_v6  ;;  %p311_p4 = scmp.lt.s32.totalorder %s309_s14, %s305_s13 }
  0x2e   :  { %93 = vadd.xlane.f32.xlu1 %v92_v7  ;;  %p312_p5 = por %p311_p4, %p310_p3 }
  0x30   :  { %v212_v44 = vld [vmem:[#allocation7] sm:$0x1]  ;;  %p313_p6 = pnand %p312_p5, %p306_p2 }
  0xb5   :  { %v83_v10 = vpop.xlane.xlu0 %82 }
  0xb6   :  { %v95_v11 = vmul.f32 0.03125, %v83_v10 }
  0xb7   :  { %v91_v12 = vpop.xlane.xlu1 %90 }
  0xb8   :  { %v97_v13 = vmul.f32 %v95_v11, %v83_v10  ;;  %v109_v26 = vsub.f32 %v75_v0, %v95_v11 }
  0xb9   :  { %v86_v14 = vpop.xlane.xlu0 %85 }
  0xba   :  { %v99_v15 = vsub.f32 %v91_v12, %v97_v13  ;;  %v96_v16 = vmul.f32 0.03125, %v86_v14 }
  0xbb   :  { %v94_v17 = vpop.xlane.xlu1 %93 }
  0xbc   :  { %v101_v18 = vmul.f32 0.032258064, %v99_v15  ;;  %v98_v19 = vmul.f32 %v96_v16, %v86_v14  ;;  %v110_v30 = vsub.f32 %v76_v1, %v96_v16 }
  0xbe   :  { %v103_v20 = vmax.f32 %v101_v18, 0.0  ;;  %v100_v21 = vsub.f32 %v94_v17, %v98_v19 }
  0xc0   :  { %v105_v22 = vadd.f32 1e-06, %v103_v20  ;;  %v102_v23 = vmul.f32 0.032258064, %v100_v21 }
  0xc2   :  { %257 = vrsqrt.f32 %v105_v22  ;;  %v104_v24 = vmax.f32 %v102_v23, 0.0 }
  0xc4   :  { %v106_v25 = vadd.f32 1e-06, %v104_v24 }
  0xc6   :  { %259 = vrsqrt.f32 %v106_v25 }
  0xcc   :  { %v258_v27 = vpop.eup %257 }
  0xcd   :  { %v111_v28 = vmul.f32 %v258_v27, %v109_v26 }
  0xcf   :  { %v113_v34 = vsub.f32 %v77_v29, %v111_v28 }
  0xd0   :  { %v260_v31 = vpop.eup %259 }
  0xd1   :  { %v112_v33 = vmul.f32 %v260_v31, %v110_v30  ;;  %v115_v36 = vmul.f32 %v113_v34, %v113_v34 }
  0xd3   :  { %v114_v35 = vsub.f32 %v78_v32, %v112_v33 }
  0xd5   :  { %v116_v37 = vmul.f32 %v114_v35, %v114_v35 }
  0xd7   :  { %v247_v38 = vpack.c.bf16 %v116_v37, %v115_v36 }
  0xd9   :  { %248 = vmatpush3.bf16.msra.mxu0 %v247_v38 }
  0xdc   :  { %244 = vmatmul.mubr.msk.f32.vlgmr.msra.gmra.mrb[0].mxu0 %vm133_vm3, %v79_v39 }
 0x1af   :  { %v203_v40 = vpop.f32.mrb[0].mxu0 }
 0x1b0   :  { %v245_v41 = vpop.f32.mrb[1].mxu0  ;;  %v208_v42 = vsel %vm207_vm4, %v203_v40, 0.0 }
 0x1b1   :  { %209 = vadd.xlane.f32.xlu0 %v208_v42 }
 0x23e   :  { %v210_v43 = vpop.xlane.xlu0 %209 }
 0x23f   :  { %v211_v45 = vmul.f32 0.03125, %v210_v43 }
 0x241   :  { %v213_v46 = vadd.f32 %v212_v44, %v211_v45 }
 0x243   :  { %215 = vst.msk [vmem:[#allocation7] sm:$0x1] %vm73_vm1, %v213_v46 }
 0x244   :  { %316 = shalt.err (!%p313_p6)
}
 0x245   :  { %s317_s16 = scalar_lea.hbm %s405_s3, 16 }
 0x246   :  { %p318_p7 = scmp.ne.s32.totalorder %s405_s3, %s317_s16  ;;  %p321_p8 = scmp.lt.u32.totalorder %s317_s16, %s405_s3 }
 0x248   :  { %p323_p9 = pnand %p321_p8, %p318_p7 }
 0x24a   :  { %326 = shalt.err (!%p323_p9)
}
 0x24b   :  { %225 = dma.vmem_to_hbm [thread:$0]  %s223_s12, 16, %s405_s3, [#allocation4]  }
 0x24c   :  { %331 = dma.done.wait [#allocation4], 16  }
 0x24d   :  { %332 = vsyncadd [#allocation4], 4294967280 }
 0x24e   :  { %229 = vsyncpa [#allocation3], 1 }
 0x24f   :  { %230 = vsyncpa [#allocation6], 1 }
 0x250   :  { %231 = vsyncpa [#allocation4], 1 }

</bundles_post_ra>
